<compile_context>
chip_gen: v6e
topology: v6e:2x2x1
jax: 0.10.0
libtpu: 0.0.40
codegen_flags: <defaults>
</compile_context>

<pallas_src>
import functools
import math

import jax
import jax.numpy as jnp
from jax.experimental import pallas as pl
from jax.experimental.pallas import tpu as pltpu


# ----------------------------------------------------------------------------
# Fused Pallas kernel
# ----------------------------------------------------------------------------
def make_fused_kernel(layer_num, input_dim, ghd):
    """Kernel closed over the static layer structure.

    Ref order: adj, node_feat, edge_feat, We_all, Wn_0..Wn_{L-1}, Wl, bl,
               out_ref, feat_scratch.
    """
    hidden = ghd * layer_num

    def kernel(*refs):
        adj_ref, nf_ref, ef_ref, we_ref = refs[:4]
        wn_refs = refs[4:4 + layer_num]
        wl_ref, bl_ref, o_ref, feat_ref = refs[4 + layer_num:]

        adj = adj_ref[...]                                   # (N, N)
        nf = nf_ref[...]                                     # (N, D)

        # -------- layer-invariant work, hoisted out of the layer loop -------
        # mean_j(edge @ We) == mean_j(edge) @ We ; all layers' We packed into
        # one (K, L*ghd) weight -> one MXU matmul produces every layer's oe.
        e_mean = jnp.mean(ef_ref[...], axis=1)               # (N, K)
        oe_all = jnp.dot(e_mean, we_ref[...],
                         preferred_element_type=jnp.float32)  # (N, L*ghd)

        # degree normalization: sum(adj, 1); zero rows -> 1; hoisted reciprocal
        nw = jnp.sum(adj, axis=1, keepdims=True)             # (N, 1)
        nw = nw + (nw == 0.0).astype(jnp.float32)
        inv_nw = 1.0 / nw                                    # exact recip, once

        # feat_ref holds the torch.cat(cache_list) buffer in VMEM scratch:
        # [:, :D] = node_feat, then each layer appends its (N, ghd) output.
        feat_ref[:, :input_dim] = nf

        for l in range(layer_num):                           # unrolled at trace time
            d_l = input_dim + ghd * l
            x_l = feat_ref[:, :d_l]                          # cat(cache_list)
            # chain_matmul reordered: adj @ (x @ Wn)
            xw = jnp.dot(x_l, wn_refs[l][...],
                         preferred_element_type=jnp.float32)           # (N, ghd)
            on = jnp.dot(adj, xw, preferred_element_type=jnp.float32)  # (N, ghd)
            oe = oe_all[:, l * ghd:(l + 1) * ghd]                      # (N, ghd)
            # bias=False; ReLU from GraphConvolution.forward fused here.
            g = jnp.maximum((oe + on) * inv_nw, 0.0)
            # TODO(synk): nn.Dropout(0.2) is identity in eval mode; train-mode
            # stochastic dropout is not reproduced here.
            feat_ref[:, d_l:d_l + ghd] = g

        # cat(output_list) == feat[:, D:D+hidden]; residual add is valid
        # because hidden_dim == input_dim in this module configuration.
        h = feat_ref[:, input_dim:input_dim + hidden] + nf   # (N, hidden)
        # final nn.Linear into a lane-dense, 128-padded output slab.
        o_ref[...] = (jnp.dot(h, wl_ref[...],
                              preferred_element_type=jnp.float32)
                      + bl_ref[...])

    return kernel


# ----------------------------------------------------------------------------
# Wrappers
# ----------------------------------------------------------------------------
def pack_params(params):
    """One-time packing: concat all We, pad the final linear to 128 lanes."""
    out_dim = params["Wl"].shape[1]
    pad = (-out_dim) % 128
    return {
        "We_all": jnp.concatenate(params["We"], axis=1),          # (K, L*ghd)
        "Wn": list(params["Wn"]),                                 # per-layer shapes
        "Wl_pad": jnp.pad(params["Wl"], ((0, 0), (0, pad))),      # (hidden, 128)
        "bl_pad": jnp.pad(params["bl"], ((0, 0), (0, pad))),      # (1, 128)
    }


@functools.partial(jax.jit, static_argnames=("layer_num", "output_dim"))
def graph_convolution_forward(packed, node_feat, edge_feat, adj_matrix, *,
                              layer_num, output_dim):
    n, input_dim = node_feat.shape
    ghd = packed["We_all"].shape[1] // layer_num
    hidden = ghd * layer_num
    out_pad = packed["Wl_pad"].shape[1]

    kernel = make_fused_kernel(layer_num, input_dim, ghd)
    vmem = pl.BlockSpec(memory_space=pltpu.MemorySpace.VMEM)
    n_inputs = 4 + layer_num + 2

    out = pl.pallas_call(
        kernel,
        out_shape=jax.ShapeDtypeStruct((n, out_pad), jnp.float32),
        in_specs=[vmem] * n_inputs,
        out_specs=vmem,
        scratch_shapes=[pltpu.VMEM((n, input_dim + hidden), jnp.float32)],
    )(adj_matrix, node_feat, edge_feat, packed["We_all"],
      *packed["Wn"], packed["Wl_pad"], packed["bl_pad"])
    return out[:, :output_dim]


# ----------------------------------------------------------------------------
# Parameter init (deterministic, mirrors the module's shapes)
# ----------------------------------------------------------------------------
def xavier_uniform(key, fan_in, fan_out):
    bound = math.sqrt(6.0 / (fan_in + fan_out))
    return jax.random.uniform(key, (fan_in, fan_out), jnp.float32, -bound, bound)


def init_params(key, layer_num, input_dim, output_dim):
    hidden_dim = output_dim
    ghd = hidden_dim // layer_num
    params = {"We": [], "Wn": []}
    for l in range(layer_num):
        key, k1, k2 = jax.random.split(key, 3)
        in_dim_l = input_dim + ghd * l
        # GraphConv(input_dim + ghd*l, edge_dim=input_dim, output_dim=ghd)
        params["We"].append(xavier_uniform(k1, input_dim, ghd))   # weights_edge
        params["Wn"].append(xavier_uniform(k2, in_dim_l, ghd))    # weights_node
    key, k1, k2 = jax.random.split(key, 3)
    bound = 1.0 / math.sqrt(hidden_dim)
    params["Wl"] = jax.random.uniform(k1, (hidden_dim, output_dim), jnp.float32,
                                      -bound, bound)   # Linear weight (pre-transposed)
    params["bl"] = jax.random.uniform(k2, (1, output_dim), jnp.float32,
                                      -bound, bound)   # Linear bias
    return params


# ----------------------------------------------------------------------------
if __name__ == "__main__":
    LAYER_NUM = 2
    INPUT_DIM = 32       # must equal output_dim (residual add in forward)
    OUTPUT_DIM = 32
    NUM_ENTITY = 8
    NUM_EDGES = 8        # "j" axis of edge_feat

    key = jax.random.PRNGKey(0)
    key, kp, kn, ke, ka = jax.random.split(key, 5)

    params = init_params(kp, LAYER_NUM, INPUT_DIM, OUTPUT_DIM)
    packed = pack_params(params)

    node_feat = jax.random.normal(kn, (NUM_ENTITY, INPUT_DIM), jnp.float32)
    edge_feat = jax.random.normal(ke, (NUM_ENTITY, NUM_EDGES, INPUT_DIM), jnp.float32)
    # random 0/1 adjacency (some rows may be all-zero -> exercises eq(.,0) fixup)
    adj_matrix = (jax.random.uniform(ka, (NUM_ENTITY, NUM_ENTITY)) > 0.6).astype(jnp.float32)

    out = graph_convolution_forward(packed, node_feat, edge_feat, adj_matrix,
                                    layer_num=LAYER_NUM, output_dim=OUTPUT_DIM)
    out = jax.block_until_ready(out)
    assert out.shape == (NUM_ENTITY, OUTPUT_DIM), out.shape

    # Pure-JAX reference of the original torch forward (eval mode) to validate
    # the fused / algebraically-reordered kernel math.
    def reference_forward(p, nf, ef, adj):
        hp = jax.lax.Precision.HIGHEST
        outputs, cache, outs = nf, [nf], []
        for l in range(LAYER_NUM):
            oe = jnp.mean(jnp.einsum("ijk,kp->ijp", ef, p["We"][l], precision=hp), axis=1)
            on = jnp.dot(jnp.dot(adj, outputs, precision=hp), p["Wn"][l], precision=hp)
            nw = jnp.sum(adj, axis=1)
            nw = (nw + (nw == 0.0).astype(jnp.float32))[:, None]
            g = jnp.maximum((oe + on) / nw, 0.0)
            cache.append(g)
            outputs = jnp.concatenate(cache, axis=-1)
            outs.append(g)
        h = jnp.concatenate(outs, axis=-1) + nf
        return jnp.dot(h, p["Wl"], precision=hp) + p["bl"]

    ref = jax.block_until_ready(reference_forward(params, node_feat, edge_feat, adj_matrix))
    max_err = float(jnp.max(jnp.abs(out - ref)))
    assert max_err < 2e-3, f"mismatch vs reference: {max_err}"

    print("KERNEL_OK")
</pallas_src>

<mosaic_0001>
module attributes {stable_mosaic.version = 11 : i64} {
  func.func @kernel(%arg0: memref<8x8xf32, #tpu.memory_space<vmem>>, %arg1: memref<8x32xf32, #tpu.memory_space<vmem>>, %arg2: memref<8x8x32xf32, #tpu.memory_space<vmem>>, %arg3: memref<32x32xf32, #tpu.memory_space<vmem>>, %arg4: memref<32x16xf32, #tpu.memory_space<vmem>>, %arg5: memref<48x16xf32, #tpu.memory_space<vmem>>, %arg6: memref<32x128xf32, #tpu.memory_space<vmem>>, %arg7: memref<1x128xf32, #tpu.memory_space<vmem>>, %arg8: memref<8x128xf32, #tpu.memory_space<vmem>>, %arg9: memref<8x64xf32, #tpu.memory_space<vmem>>) attributes {dimension_semantics = [], scalar_prefetch = 0 : i64, scratch_operands = 1 : i64, tpu.core_type = #tpu.core_type<tc>} {
    %c0 = arith.constant 0 : index
    %c0_0 = arith.constant 0 : index
    %0 = vector.load %arg0[%c0, %c0_0] : memref<8x8xf32, #tpu.memory_space<vmem>>, vector<8x8xf32>
    %c0_1 = arith.constant 0 : index
    %c0_2 = arith.constant 0 : index
    %1 = vector.load %arg1[%c0_1, %c0_2] : memref<8x32xf32, #tpu.memory_space<vmem>>, vector<8x32xf32>
    %c0_3 = arith.constant 0 : index
    %c0_4 = arith.constant 0 : index
    %c0_5 = arith.constant 0 : index
    %2 = vector.load %arg2[%c0_3, %c0_4, %c0_5] : memref<8x8x32xf32, #tpu.memory_space<vmem>>, vector<8x8x32xf32>
    %cst = arith.constant dense<0.000000e+00> : vector<8x32xf32>
    %3 = vector.multi_reduction <add>, %2, %cst [1] : vector<8x8x32xf32> to vector<8x32xf32>
    %cst_6 = arith.constant 8.000000e+00 : f32
    %4 = vector.broadcast %cst_6 : f32 to vector<8x32xf32>
    %5 = arith.divf %3, %4 : vector<8x32xf32>
    %c0_7 = arith.constant 0 : index
    %c0_8 = arith.constant 0 : index
    %6 = vector.load %arg3[%c0_7, %c0_8] : memref<32x32xf32, #tpu.memory_space<vmem>>, vector<32x32xf32>
    %cst_9 = arith.constant dense<0.000000e+00> : vector<8x32xf32>
    %7 = tpu.matmul %5, %6, %cst_9 {dimension_numbers = #tpu.dot_dimension_numbers<[1], [0], [0], [1], [0, 0, 1, 1], [], []>} : vector<8x32xf32>, vector<32x32xf32>, vector<8x32xf32> -> vector<8x32xf32>
    %cst_10 = arith.constant dense<0.000000e+00> : vector<8xf32>
    %8 = vector.multi_reduction <add>, %0, %cst_10 [1] : vector<8x8xf32> to vector<8xf32>
    %9 = vector.shape_cast %8 : vector<8xf32> to vector<8x1xf32>
    %cst_11 = arith.constant 0.000000e+00 : f32
    %10 = vector.broadcast %cst_11 : f32 to vector<8x1xf32>
    %11 = arith.cmpf oeq, %9, %10 : vector<8x1xf32>
    %12 = arith.extui %11 : vector<8x1xi1> to vector<8x1xi32>
    %13 = arith.sitofp %12 : vector<8x1xi32> to vector<8x1xf32>
    %14 = arith.addf %9, %13 : vector<8x1xf32>
    %cst_12 = arith.constant 1.000000e+00 : f32
    %15 = vector.broadcast %cst_12 : f32 to vector<8x1xf32>
    %16 = arith.divf %15, %14 : vector<8x1xf32>
    %c0_13 = arith.constant 0 : index
    %c0_14 = arith.constant 0 : index
    %17 = vector.load %arg9[%c0_13, %c0_14] : memref<8x64xf32, #tpu.memory_space<vmem>>, vector<8x32xf32>
    tpu.vector_store %arg9[%c0_13, %c0_14], %1 {strides = array<i32>} : memref<8x64xf32, #tpu.memory_space<vmem>>, vector<8x32xf32>,
    %c0_15 = arith.constant 0 : index
    %c0_16 = arith.constant 0 : index
    %18 = vector.load %arg9[%c0_15, %c0_16] : memref<8x64xf32, #tpu.memory_space<vmem>>, vector<8x32xf32>
    %c0_17 = arith.constant 0 : index
    %c0_18 = arith.constant 0 : index
    %19 = vector.load %arg4[%c0_17, %c0_18] : memref<32x16xf32, #tpu.memory_space<vmem>>, vector<32x16xf32>
    %cst_19 = arith.constant dense<0.000000e+00> : vector<8x16xf32>
    %20 = tpu.matmul %18, %19, %cst_19 {dimension_numbers = #tpu.dot_dimension_numbers<[1], [0], [0], [1], [0, 0, 1, 1], [], []>} : vector<8x32xf32>, vector<32x16xf32>, vector<8x16xf32> -> vector<8x16xf32>
    %cst_20 = arith.constant dense<0.000000e+00> : vector<8x16xf32>
    %21 = tpu.matmul %0, %20, %cst_20 {dimension_numbers = #tpu.dot_dimension_numbers<[1], [0], [0], [1], [0, 0, 1, 1], [], []>} : vector<8x8xf32>, vector<8x16xf32>, vector<8x16xf32> -> vector<8x16xf32>
    %22 = vector.extract_strided_slice %7 {offsets = [0, 0], sizes = [8, 16], strides = [1, 1]} : vector<8x32xf32> to vector<8x16xf32>
    %23 = arith.addf %22, %21 : vector<8x16xf32>
    %24 = vector.broadcast %16 : vector<8x1xf32> to vector<8x16xf32>
    %25 = arith.mulf %23, %24 : vector<8x16xf32>
    %cst_21 = arith.constant 0.000000e+00 : f32
    %26 = vector.broadcast %cst_21 : f32 to vector<8x16xf32>
    %27 = arith.maximumf %25, %26 : vector<8x16xf32>
    %c0_22 = arith.constant 0 : index
    %c32 = arith.constant 32 : index
    %28 = vector.load %arg9[%c0_22, %c32] : memref<8x64xf32, #tpu.memory_space<vmem>>, vector<8x16xf32>
    tpu.vector_store %arg9[%c0_22, %c32], %27 {strides = array<i32>} : memref<8x64xf32, #tpu.memory_space<vmem>>, vector<8x16xf32>,
    %c0_23 = arith.constant 0 : index
    %c0_24 = arith.constant 0 : index
    %29 = vector.load %arg9[%c0_23, %c0_24] : memref<8x64xf32, #tpu.memory_space<vmem>>, vector<8x48xf32>
    %c0_25 = arith.constant 0 : index
    %c0_26 = arith.constant 0 : index
    %30 = vector.load %arg5[%c0_25, %c0_26] : memref<48x16xf32, #tpu.memory_space<vmem>>, vector<48x16xf32>
    %cst_27 = arith.constant dense<0.000000e+00> : vector<8x16xf32>
    %31 = tpu.matmul %29, %30, %cst_27 {dimension_numbers = #tpu.dot_dimension_numbers<[1], [0], [0], [1], [0, 0, 1, 1], [], []>} : vector<8x48xf32>, vector<48x16xf32>, vector<8x16xf32> -> vector<8x16xf32>
    %cst_28 = arith.constant dense<0.000000e+00> : vector<8x16xf32>
    %32 = tpu.matmul %0, %31, %cst_28 {dimension_numbers = #tpu.dot_dimension_numbers<[1], [0], [0], [1], [0, 0, 1, 1], [], []>} : vector<8x8xf32>, vector<8x16xf32>, vector<8x16xf32> -> vector<8x16xf32>
    %33 = vector.extract_strided_slice %7 {offsets = [0, 16], sizes = [8, 16], strides = [1, 1]} : vector<8x32xf32> to vector<8x16xf32>
    %34 = arith.addf %33, %32 : vector<8x16xf32>
    %35 = vector.broadcast %16 : vector<8x1xf32> to vector<8x16xf32>
    %36 = arith.mulf %34, %35 : vector<8x16xf32>
    %cst_29 = arith.constant 0.000000e+00 : f32
    %37 = vector.broadcast %cst_29 : f32 to vector<8x16xf32>
    %38 = arith.maximumf %36, %37 : vector<8x16xf32>
    %c0_30 = arith.constant 0 : index
    %c48 = arith.constant 48 : index
    %39 = vector.load %arg9[%c0_30, %c48] : memref<8x64xf32, #tpu.memory_space<vmem>>, vector<8x16xf32>
    tpu.vector_store %arg9[%c0_30, %c48], %38 {strides = array<i32>} : memref<8x64xf32, #tpu.memory_space<vmem>>, vector<8x16xf32>,
    %c0_31 = arith.constant 0 : index
    %c32_32 = arith.constant 32 : index
    %40 = vector.load %arg9[%c0_31, %c32_32] : memref<8x64xf32, #tpu.memory_space<vmem>>, vector<8x32xf32>
    %41 = arith.addf %40, %1 : vector<8x32xf32>
    %c0_33 = arith.constant 0 : index
    %c0_34 = arith.constant 0 : index
    %42 = vector.load %arg6[%c0_33, %c0_34] : memref<32x128xf32, #tpu.memory_space<vmem>>, vector<32x128xf32>
    %cst_35 = arith.constant dense<0.000000e+00> : vector<8x128xf32>
    %43 = tpu.matmul %41, %42, %cst_35 {dimension_numbers = #tpu.dot_dimension_numbers<[1], [0], [0], [1], [0, 0, 1, 1], [], []>} : vector<8x32xf32>, vector<32x128xf32>, vector<8x128xf32> -> vector<8x128xf32>
    %c0_36 = arith.constant 0 : index
    %c0_37 = arith.constant 0 : index
    %44 = vector.load %arg7[%c0_36, %c0_37] : memref<1x128xf32, #tpu.memory_space<vmem>>, vector<1x128xf32>
    %45 = vector.broadcast %44 : vector<1x128xf32> to vector<8x128xf32>
    %46 = arith.addf %43, %45 : vector<8x128xf32>
    %c0_38 = arith.constant 0 : index
    %c0_39 = arith.constant 0 : index
    %47 = vector.load %arg8[%c0_38, %c0_39] : memref<8x128xf32, #tpu.memory_space<vmem>>, vector<8x128xf32>
    tpu.vector_store %arg8[%c0_38, %c0_39], %46 {strides = array<i32>} : memref<8x128xf32, #tpu.memory_space<vmem>>, vector<8x128xf32>,
    return
  }
}

</mosaic_0001>

<bundles_post_ra>
// kernel: graph_convolution_forward.1
= control target key start
LH: loop header
LB: loop body
LE: loop exit
PB: predicated region body
PF: predicated region fallthrough
CT: control target
= control target key end

     0   :  { %13 = vsyncpa [#allocation4], 0  ;;  %s1001_s0 = inlined_call_operand.vmem [shape: f32[8,8], index: 0, kind: input, shape index: {}]   ;;  %s1002_s1 = inlined_call_operand.vmem [shape: f32[8,32], index: 1, kind: input, shape index: {}]   ;;  %s1003_s2 = inlined_call_operand.vmem [shape: f32[8,8,32], index: 2, kind: input, shape index: {}]   ;;  %s1004_s3 = inlined_call_operand.vmem [shape: f32[32,32], index: 3, kind: input, shape index: {}]   ;;  %s1005_s4 = inlined_call_operand.vmem [shape: f32[32,16], index: 4, kind: input, shape index: {}]   ;;  %s1006_s5 = inlined_call_operand.vmem [shape: f32[48,16], index: 5, kind: input, shape index: {}]   ;;  %s1007_s6 = inlined_call_operand.hbm [shape: f32[32,128], index: 6, kind: input, shape index: {}]   ;;  %s1008_s7 = inlined_call_operand.vmem [shape: f32[1,128], index: 7, kind: input, shape index: {}]   ;;  %s1009_s8 = inlined_call_operand.hbm [shape: f32[8,128], index: 8, kind: output, shape index: {}]  }
   0x1   :  { %14 = vsyncpa [#allocation5], 0  ;;  %s808_s27 = smov [#allocation3]  }
   0x2   :  { %s32_s28 = sshll.u32 %s808_s27, 4  ;;  %s33_s28 = int_to_ptr.vmem [resolvable:$true] %s32_s28 }
   0x3   :  { %s772_s29 = scalar_lea.vmem %s33_s28, 512  ;;  %p777_p1 = scmp.lt.s32.totalorder %s33_s28, %s33_s28 }
   0x4   :  { %p773_p0 = scmp.ne.s32.totalorder %s33_s28, %s772_s29  ;;  %p778_p2 = scmp.lt.s32.totalorder %s772_s29, %s772_s29 }
   0x6   :  { %p779_p3 = por %p778_p2, %p777_p1 }
   0x8   :  { %p780_p4 = pnand %p779_p3, %p773_p0 }
   0xa   :  { %783 = shalt.err (!%p780_p4)
}
   0xb   :  { %s809_s30 = smov 128   ;;  %s810_s9 = smov 8  }
   0xc   :  { %38 = dma.hbm_to_vmem [thread:$0]  %s1007_s6, 512, %s33_s28, [#allocation4], %s809_s30, %s809_s30, %s810_s9  }
   0xd   :  { %804 = dma.done.wait [#allocation4], 512  }
   0xe   :  { %805 = vsyncadd [#allocation4], 4294966784  ;;  %v811_v0 = vmov 0.0   ;;  %vm812_vm0 = vmmov 0   ;;  %vm54_vm1 = vcmask 261120   ;;  %v233_v1 = vld [vmem:[%s1005_s4 + $0x18] sm:$0xff] }
   0xf   :  { %706 = vmatprep.subr.mxu1 %v811_v0  ;;  %714 = vmatprep.mubr.msk.f32.mxu1 %vm812_vm0, %v811_v0  ;;  %v232_v2 = vld [vmem:[%s1005_s4 + $0x10] sm:$0xff]  ;;  %v231_v3 = vld [vmem:[%s1005_s4 + $0x8] sm:$0xff]  ;;  %v883_v4 = vld [vmem:[%s1002_s1] sm:$0xff]  ;;  %vm132_vm2 = vcmask 1041409   ;;  %vm134_vm3 = vcmask 1042434   ;;  %vm136_vm4 = vcmask 1043459  }
  0x10   :  { %695 = vmatprep.subr.mxu0 %v811_v0  ;;  %703 = vmatprep.mubr.msk.f32.mxu0 %vm812_vm0, %v811_v0  ;;  %v123_v5 = vld [vmem:[%s1004_s3 + $0x18] sm:$0xff]  ;;  %v230_v6 = vld [vmem:[%s1005_s4] sm:$0xff]  ;;  %228 = vst.msk [vmem:[#allocation2] sm:$0xff] %vm54_vm1, %v883_v4  ;;  %v122_v7 = vld [vmem:[%s1004_s3 + $0x10] sm:$0xff]  ;;  %vm138_vm5 = vcmask 1044484   ;;  %vm140_vm6 = vcmask 1045509  }
  0x11   :  { %707 = vmatpush3.msra.mxu1 %v233_v1  ;;  %696 = vmatpush3.msra.mxu0 %v123_v5  ;;  %v121_v8 = vld [vmem:[%s1004_s3 + $0x8] sm:$0xff]  ;;  %v120_v9 = vld [vmem:[%s1004_s3] sm:$0xff]  ;;  %v48_v12 = vld [vmem:[%s1003_s2 + $0x10] sm:$0xff]  ;;  %vm142_vm7 = vcmask 1046534   ;;  %vm144_vm8 = vcmask 1047559   ;;  %vm218_vm9 = vcmask 64512  }
  0x12   :  { %708 = vmatprep.subr.mxu1 %v811_v0  ;;  %697 = vmatprep.subr.mxu0 %v811_v0  ;;  %v46_v10 = vld [vmem:[%s1003_s2] sm:$0xff]  ;;  %v47_v11 = vld [vmem:[%s1003_s2 + $0x8] sm:$0xff]  ;;  %v49_v13 = vld [vmem:[%s1003_s2 + $0x18] sm:$0xff]  ;;  %v69_v18 = vsel %vm54_vm1, %v48_v12, 0.0  ;;  %s813_s29 = smov 32   ;;  %vm387_vm11 = vcmask 392448  }
  0x13   :  { %709 = vmatpush3.msra.mxu1 %v232_v2  ;;  %698 = vmatpush3.msra.mxu0 %v122_v7  ;;  %v50_v14 = vld [vmem:[%s1003_s2 + $0x20] sm:$0xff]  ;;  %v51_v15 = vld [vmem:[%s1003_s2 + $0x28] sm:$0xff]  ;;  %v55_v16 = vsel %vm54_vm1, %v46_v10, 0.0  ;;  %v62_v17 = vsel %vm54_vm1, %v47_v11, 0.0  ;;  %v52_v19 = vld [vmem:[%s1003_s2 + $0x30] sm:$0xff]  ;;  %v70_v23 = vrot.slane %v69_v18, 4 }
  0x14   :  { %710 = vmatprep.subr.mxu1 %v811_v0  ;;  %699 = vmatprep.subr.mxu0 %v811_v0  ;;  %v53_v20 = vld [vmem:[%s1003_s2 + $0x38] sm:$0xff]  ;;  %v56_v21 = vrot.slane %v55_v16, 4  ;;  %v63_v22 = vrot.slane %v62_v17, 4  ;;  %v76_v24 = vsel %vm54_vm1, %v49_v13, 0.0  ;;  %v83_v26 = vsel %vm54_vm1, %v50_v14, 0.0  ;;  %s815_s30 = smov 96  }
  0x15   :  { %711 = vmatpush3.msra.mxu1 %v231_v3  ;;  %700 = vmatpush3.msra.mxu0 %v121_v8  ;;  %v77_v25 = vrot.slane %v76_v24, 4  ;;  %v90_v27 = vsel %vm54_vm1, %v51_v15, 0.0  ;;  %v97_v28 = vsel %vm54_vm1, %v52_v19, 0.0  ;;  %v71_v31 = vadd.f32 %v70_v23, %v69_v18  ;;  %s816_s11 = smov [#allocation6]  }
  0x16   :  { %712 = vmatprep.subr.mxu1 %v811_v0  ;;  %701 = vmatprep.subr.mxu0 %v811_v0  ;;  %v57_v29 = vadd.f32 %v56_v21, %v55_v16  ;;  %v64_v30 = vadd.f32 %v63_v22, %v62_v17  ;;  %v84_v32 = vrot.slane %v83_v26, 4  ;;  %v91_v34 = vrot.slane %v90_v27, 4  ;;  %s652_s12 = sshll.u32 %s816_s11, 4  ;;  %s653_s12 = int_to_ptr.vmem [resolvable:$true] %s652_s12 }
  0x17   :  { %713 = vmatpush3.msra.mxu1 %v230_v6  ;;  %702 = vmatpush3.msra.mxu0 %v120_v9  ;;  %v78_v33 = vadd.f32 %v77_v25, %v76_v24  ;;  %v98_v35 = vrot.slane %v97_v28, 4  ;;  %v104_v36 = vsel %vm54_vm1, %v53_v20, 0.0  ;;  %v229_v37 = vld [vmem:[#allocation2] sm:$0xff]  ;;  %v72_v40 = vrot.slane %v71_v31, 2  ;;  %s784_s3 = scalar_lea.vmem %s653_s12, 128  ;;  %p789_p6 = scmp.lt.s32.totalorder %s653_s12, %s653_s12 }
  0x18   :  { %722 = vmatprep.subr.mxu1 %v811_v0  ;;  %v58_v38 = vrot.slane %v57_v29, 2  ;;  %v65_v39 = vrot.slane %v64_v30, 2  ;;  %v85_v41 = vadd.f32 %v84_v32, %v83_v26  ;;  %717 = vmatprep.subr.mxu0 %v811_v0  ;;  %v92_v43 = vadd.f32 %v91_v34, %v90_v27  ;;  %v395_v34 = vld [vmem:[%s1006_s5 + $0x28] sm:$0xff]  ;;  %p785_p5 = scmp.ne.s32.totalorder %s653_s12, %s784_s3  ;;  %p790_p7 = scmp.lt.s32.totalorder %s784_s3, %s784_s3 }
  0x19   :  { %715 = vmatmul.mubr.msk.f32.vlgmr.msra.gmra.mxu1 %vm54_vm1, %v229_v37  ;;  %v79_v42 = vrot.slane %v78_v33, 2  ;;  %v99_v44 = vadd.f32 %v98_v35, %v97_v28  ;;  %v105_v45 = vrot.slane %v104_v36, 4  ;;  %v73_v48 = vadd.f32 %v72_v40, %v71_v31  ;;  %v44_v28 = vld [vmem:[%s1001_s0] sm:$0xff]  ;;  %v392_v40 = vld [vmem:[%s1006_s5 + $0x10] sm:$0xff] }
  0x1a   :  { %v59_v46 = vadd.f32 %v58_v38, %v57_v29  ;;  %v66_v47 = vadd.f32 %v65_v39, %v64_v30  ;;  %v86_v49 = vrot.slane %v85_v41, 2  ;;  %734 = vmatprep.mubr.msk.f32.mxu1 %vm812_vm0, %v811_v0  ;;  %v93_v51 = vrot.slane %v92_v43, 2  ;;  %v394_v35 = vld [vmem:[%s1006_s5 + $0x20] sm:$0xff]  ;;  %723 = vmatpush3.msra.mxu1 %v395_v34  ;;  %v393_v39 = vld [vmem:[%s1006_s5 + $0x18] sm:$0xff]  ;;  %p791_p8 = por %p790_p7, %p789_p6 }
  0x1b   :  { %v80_v50 = vadd.f32 %v79_v42, %v78_v33  ;;  %v100_v52 = vrot.slane %v99_v44, 2  ;;  %v106_v53 = vadd.f32 %v105_v45, %v104_v36  ;;  %v74_v56 = vrot.slane %v73_v48, 1  ;;  %724 = vmatprep.subr.mxu1 %v811_v0  ;;  %v390_v42 = vld [vmem:[%s1006_s5] sm:$0xff] }
  0x1c   :  { %v60_v54 = vrot.slane %v59_v46, 1  ;;  %v67_v55 = vrot.slane %v66_v47, 1  ;;  %v87_v57 = vadd.f32 %v86_v49, %v85_v41  ;;  %v94_v59 = vadd.f32 %v93_v51, %v92_v43  ;;  %725 = vmatpush3.msra.mxu1 %v394_v35  ;;  %v391_v41 = vld [vmem:[%s1006_s5 + $0x8] sm:$0xff]  ;;  %s814_s5 = smov 16   ;;  %p792_p9 = pnand %p791_p8, %p785_p5 }
  0x1d   :  { %v81_v58 = vrot.slane %v80_v50, 1  ;;  %v101_v60 = vadd.f32 %v100_v52, %v99_v44  ;;  %v107_v61 = vrot.slane %v106_v53, 2  ;;  %v75_v1 = vadd.f32 %v74_v56, %v73_v48  ;;  %726 = vmatprep.subr.mxu1 %v811_v0 }
  0x1e   :  { %v61_v62 = vadd.f32 %v60_v54, %v59_v46  ;;  %v68_v63 = vadd.f32 %v67_v55, %v66_v47  ;;  %v88_v2 = vrot.slane %v87_v57, 1  ;;  %v95_v5 = vrot.slane %v94_v59, 1  ;;  %727 = vmatpush3.msra.mxu1 %v393_v39 }
  0x1f   :  { %v82_v3 = vadd.f32 %v81_v58, %v80_v50  ;;  %v102_v6 = vrot.slane %v101_v60, 1  ;;  %v108_v7 = vadd.f32 %v107_v61, %v106_v53  ;;  %v114_v11 = vmul.f32 0.125, %v75_v1  ;;  %728 = vmatprep.subr.mxu1 %v811_v0  ;;  %v562_v58 = vld [vmem:[#allocation3 + $0x18] sm:$0xff]  ;;  %v560_v61 = vld [vmem:[#allocation3 + $0x8] sm:$0xff] }
  0x20   :  { %v89_v8 = vadd.f32 %v88_v2, %v87_v57  ;;  %v112_v9 = vmul.f32 0.125, %v61_v62  ;;  %v113_v10 = vmul.f32 0.125, %v68_v63  ;;  %v96_v12 = vadd.f32 %v95_v5, %v94_v59  ;;  %729 = vmatpush3.msra.mxu1 %v392_v40  ;;  %v561_v59 = vld [vmem:[#allocation3 + $0x10] sm:$0xff]  ;;  %v559_v62 = vld [vmem:[#allocation3] sm:$0xff] }
  0x21   :  { %v103_v13 = vadd.f32 %v102_v6, %v101_v60  ;;  %v109_v14 = vrot.slane %v108_v7, 1  ;;  %v115_v15 = vmul.f32 0.125, %v82_v3  ;;  %v219_v29 = vsel %vm218_vm9, %v44_v28, 0.0  ;;  %730 = vmatprep.subr.mxu1 %v811_v0  ;;  %v667_v6 = vld [vmem:[%s1008_s7] ss:$0 sm:$0xff] }
  0x22   :  { %v116_v16 = vmul.f32 0.125, %v89_v8  ;;  %v133_v17 = vsel %vm132_vm2, %v113_v10, %v112_v9  ;;  %v117_v19 = vmul.f32 0.125, %v96_v12  ;;  %220 = vadd.xlane.f32.xlu0 %v219_v29  ;;  %731 = vmatpush3.msra.mxu1 %v391_v41  ;;  %vm396_vm12 = vcmask 392192  }
  0x23   :  { %v110_v18 = vadd.f32 %v109_v14, %v108_v7  ;;  %v118_v20 = vmul.f32 0.125, %v103_v13  ;;  %v135_v21 = vsel %vm134_vm3, %v114_v11, %v133_v17  ;;  %732 = vmatprep.subr.mxu1 %v811_v0  ;;  %vm551_vm13 = vcmask 523648  }
  0x24   :  { %v137_v22 = vsel %vm136_vm4, %v115_v15, %v135_v21  ;;  %733 = vmatpush3.msra.mxu1 %v390_v42 }
  0x25   :  { %v119_v23 = vmul.f32 0.125, %v110_v18  ;;  %v139_v24 = vsel %vm138_vm5, %v116_v16, %v137_v22 }
  0x26   :  { %v141_v25 = vsel %vm140_vm6, %v117_v19, %v139_v24 }
  0x27   :  { %v143_v26 = vsel %vm142_vm7, %v118_v20, %v141_v25 }
  0x28   :  { %v145_v27 = vsel %vm144_vm8, %v119_v23, %v143_v26 }
  0x29   :  { %704 = vmatmul.mubr.msk.f32.vlgmr.msra.gmra.mxu0 %vm54_vm1, %v145_v27 }
  0x2a   :  { %719 = vmatprep.mubr.msk.f32.mxu0 %vm812_vm0, %v811_v0 }
  0xab   :  { %v221_v36 = vpop.xlane.xlu0 %220 }
  0xac   :  { %vm222_vm10 = vcmp.eq.f32.partialorder %v221_v36, 0.0 }
  0xad   :  { %v662_v37 = vsel %vm222_vm10, 1.0, %v811_v0 }
  0xae   :  { %v225_v38 = vadd.f32 %v662_v37, %v221_v36 }
  0xb0   :  { %762 = vrcp.f32 %v225_v38 }
  0xbd   :  { %v763_v45 = vpop.eup %762 }
  0xd9   :  { %v303_v30 = vpop.f32.mrf.mxu1 }
  0xda   :  { %718 = vmatpush3.msra.mxu0 %v303_v30 }
  0xdb   :  { %v716_v31 = vpop.f32.mrf.mxu1  ;;  %720 = vmatmul.mubr.msk.f32.vlgmr.msra.gmra.mxu0 %vm218_vm9, %v44_v28  ;;  %737 = vmatprep.subr.mxu0 %v811_v0 }
  0xdc   :  { %739 = vmatprep.mubr.msk.f32.mxu0 %vm812_vm0, %v811_v0 }
  0xe9   :  { %v214_v32 = vpop.f32.mrf.mxu0 }
  0xeb   :  { %v705_v33 = vpop.f32.mrf.mxu0 }
 0x19b   :  { %v376_v43 = vpop.f32.mrf.mxu0 }
 0x19c   :  { %v380_v44 = vadd.f32 %v376_v43, %v214_v32 }
 0x19d   :  { %v721_v46 = vpop.f32.mrf.mxu0 }
 0x19e   :  { %v381_v47 = vmul.f32 %v763_v45, %v380_v44 }
 0x1a0   :  { %v382_v48 = vmax.f32 %v381_v47, 0.0 }
 0x1a2   :  { %384 = vrot.lane.b32.xlu0 %v382_v48, %s813_s29 }
 0x214   :  { %v385_v49 = vpop.permute.xlu0 %384 }
 0x215   :  { %388 = vst.msk [vmem:[#allocation2] sm:$0xff] %vm387_vm11, %v385_v49 }
 0x21c   :  { %v389_v50 = vld [vmem:[#allocation2] sm:$0xff] }
 0x21d   :  { %735 = vmatmul.mubr.msk.f32.vlgmr.msra.gmra.mxu1 %vm396_vm12, %v389_v50 }
 0x2dd   :  { %v466_v51 = vpop.f32.mrf.mxu1 }
 0x2de   :  { %738 = vmatpush3.msra.mxu0 %v466_v51 }
 0x2df   :  { %v736_v52 = vpop.f32.mrf.mxu1  ;;  %740 = vmatmul.mubr.msk.f32.vlgmr.msra.gmra.mxu0 %vm218_vm9, %v44_v28  ;;  %742 = vmatprep.subr.mxu0 %v811_v0 }
 0x2e0   :  { %750 = vmatprep.mubr.msk.f32.mxu0 %vm812_vm0, %v811_v0  ;;  %743 = vmatpush3.msra.mxu0 %v562_v58 }
 0x2e1   :  { %744 = vmatprep.subr.mxu0 %v811_v0 }
 0x2e2   :  { %745 = vmatpush3.msra.mxu0 %v561_v59 }
 0x2e3   :  { %746 = vmatprep.subr.mxu0 %v811_v0 }
 0x2e4   :  { %747 = vmatpush3.msra.mxu0 %v560_v61 }
 0x2e5   :  { %748 = vmatprep.subr.mxu0 %v811_v0 }
 0x2e6   :  { %749 = vmatpush3.msra.mxu0 %v559_v62 }
 0x39f   :  { %v536_v53 = vpop.f32.mrf.mxu0 }
 0x3a0   :  { %541 = vrot.lane.b32.xlu1 %v536_v53, %s814_s5 }
 0x3a1   :  { %v741_v54 = vpop.f32.mrf.mxu0 }
 0x412   :  { %v542_v55 = vpop.permute.xlu1 %541 }
 0x413   :  { %v544_v56 = vadd.f32 %v542_v55, %v214_v32 }
 0x415   :  { %v545_v57 = vmul.f32 %v763_v45, %v544_v56 }
 0x417   :  { %v546_v60 = vmax.f32 %v545_v57, 0.0 }
 0x419   :  { %548 = vrot.lane.b32.xlu1 %v546_v60, %s813_s29 }
 0x41d   :  { %555 = vrot.lane.b32.xlu1 %v883_v4, %s813_s29 }
 0x48b   :  { %v549_v63 = vpop.permute.xlu1 %548 }
 0x48c   :  { %552 = vst.msk [vmem:[#allocation2] sm:$0xff] %vm551_vm13, %v549_v63 }
 0x48f   :  { %v556_v1 = vpop.permute.xlu1 %555 }
 0x493   :  { %v553_v2 = vld [vmem:[#allocation2] sm:$0xff] }
 0x494   :  { %v558_v3 = vadd.f32 %v556_v1, %v553_v2 }
 0x496   :  { %571 = vrot.lane.b32.xlu1 %v558_v3, %s815_s30 }
 0x508   :  { %v572_v5 = vpop.permute.xlu1 %571 }
 0x509   :  { %751 = vmatmul.mubr.msk.f32.vlgmr.msra.gmra.mxu0 %vm54_vm1, %v572_v5 }
 0x5c9   :  { %v641_v0 = vpop.f32.mrf.mxu0 }
 0x5ca   :  { %v642_v4 = vadd.f32 %v667_v6, %v641_v0 }
 0x5cb   :  { %v752_v7 = vpop.f32.mrf.mxu0 }
 0x5cc   :  { %645 = vst [vmem:[#allocation6] sm:$0xff] %v642_v4 }
 0x5cd   :  { %795 = shalt.err (!%p792_p9)
}
 0x5ce   :  { %655 = dma.vmem_to_hbm [thread:$0]  %s653_s12, 128, %s1009_s8, [#allocation5]  }
 0x5cf   :  { %806 = dma.done.wait [#allocation5], 128  }
 0x5d0   :  { %807 = vsyncadd [#allocation5], 4294967168 }
 0x5d1   :  { %659 = vsyncpa [#allocation4], 1 }
 0x5d2   :  { %660 = vsyncpa [#allocation5], 1 }

</bundles_post_ra>
